<compile_context>
chip_gen: v7x
topology: tpu7x:2x2x1
jax: 0.10.0
libtpu: 0.0.40
codegen_flags: <defaults>
</compile_context>

<pallas_src>
import jax
import jax.numpy as jnp
from jax import lax
from jax.experimental import pallas as pl
from jax.experimental.pallas import tpu as pltpu

_LOWBIAS_M1 = 0x7FEB352D          # 2146121005, fits in int32
_LOWBIAS_M2 = -2073254261         # 0x846CA68B reinterpreted as int32
_INV_2POW24 = 1.0 / 16777216.0


def _srl(x, n):
    """Logical right shift for int32 values (arithmetic shift + mask)."""
    return (x >> n) & ((1 << (32 - n)) - 1)


def _mix32(x):
    """lowbias32: good-quality 32-bit integer mixer (wrapping int32 math)."""
    x = x ^ _srl(x, 16)
    x = x * _LOWBIAS_M1
    x = x ^ _srl(x, 15)
    x = x * _LOWBIAS_M2
    x = x ^ _srl(x, 16)
    return x


def _downsample_kernel(seed_ref, coords_ref, inv_side_ref, out_ref):
    rows, lanes = coords_ref.shape                     # (block_rows, LANES)

    # Global flat element index of every element in this block (tiling-invariant).
    row = lax.broadcasted_iota(jnp.int32, (rows, lanes), 0)
    col = lax.broadcasted_iota(jnp.int32, (rows, lanes), 1)
    base = pl.program_id(0) * (rows * lanes)
    idx = base + row * lanes + col

    # One counter-based 32-bit draw per element.
    key = _mix32(seed_ref[0])
    bits = _mix32(idx ^ key)

    # Uniform [0,1) from the high 24 bits; sign from bit 0.
    u = _srl(bits, 8).astype(jnp.float32) * jnp.float32(_INV_2POW24)
    sign = jnp.float32(1.0) - jnp.float32(2.0) * (bits & 1).astype(jnp.float32)

    # Q = sign * (sqrt(U) - 1) / sidelength   (== (b*Y + ~b*Z) / sidelength)
    q = sign * (jnp.sqrt(u) - jnp.float32(1.0)) * inv_side_ref[...]
    out_ref[...] = coords_ref[...] + q


def image_downsampling(coords, sidelength, seed, downsample=True,
                       lanes=512, target_block_elems=1 << 18):
    """coords: (..., 2); sidelength: int or (2,); returns coords + blur offset."""
    if not downsample:
        return coords

    assert lanes % 128 == 0
    orig_shape = coords.shape
    orig_dtype = coords.dtype
    assert orig_shape[-1] == 2, "coords last dim must be (u, v)"

    if isinstance(sidelength, int):
        sidelength = (sidelength, sidelength)
    inv_side = 1.0 / jnp.asarray(sidelength, jnp.float32).reshape(2)
    # Lane pattern [1/su, 1/sv, 1/su, 1/sv, ...] — matches u/v alternation below.
    inv_lane = jnp.tile(inv_side, lanes // 2).reshape(1, lanes)

    flat = coords.astype(jnp.float32).reshape(-1)      # row-major: u,v alternate
    total = flat.shape[0]

    rows_needed = -(-total // lanes)
    block_rows = max(8, min(target_block_elems // lanes, rows_needed))
    block_rows = -(-block_rows // 8) * 8               # multiple of 8 sublanes
    n_blocks = -(-rows_needed // block_rows)
    rows = n_blocks * block_rows

    pad = rows * lanes - total
    if pad:
        flat = jnp.pad(flat, (0, pad))
    x2d = flat.reshape(rows, lanes)

    seed_arr = jnp.asarray([seed], dtype=jnp.int32)

    out2d = pl.pallas_call(
        _downsample_kernel,
        out_shape=jax.ShapeDtypeStruct((rows, lanes), jnp.float32),
        grid_spec=pltpu.PrefetchScalarGridSpec(
            num_scalar_prefetch=1,
            grid=(n_blocks,),
            in_specs=[
                pl.BlockSpec((block_rows, lanes), lambda i, seed: (i, 0)),
                pl.BlockSpec((1, lanes), lambda i, seed: (0, 0)),
            ],
            out_specs=pl.BlockSpec((block_rows, lanes), lambda i, seed: (i, 0)),
        ),
        compiler_params=pltpu.CompilerParams(
            dimension_semantics=("parallel",),
        ),
    )(seed_arr, x2d, inv_lane)

    out_flat = out2d.reshape(-1)
    if pad:
        out_flat = out_flat[:total]
    return out_flat.reshape(orig_shape).astype(orig_dtype)


if __name__ == "__main__":
    key = jax.random.PRNGKey(0)
    sidelength = jnp.array([16.0, 32.0], dtype=jnp.float32)
    bound = 1.0 / sidelength + 1e-6                    # per-component |Q| bound

    B, N = 2, 4096
    coords = jax.random.uniform(key, (B, N, 2), jnp.float32,
                                minval=-1.0, maxval=1.0)

    out = jax.block_until_ready(image_downsampling(coords, sidelength, seed=1234))
    assert out.shape == coords.shape and out.dtype == jnp.float32
    q = out - coords
    assert bool(jnp.all(jnp.isfinite(out)))
    assert bool(jnp.all(jnp.abs(q) <= bound)), "offset outside bilinear support"
    assert bool(jnp.any(q != 0.0))

    # Same seed, smaller blocks -> multi-step grid; sampling is tiling-invariant.
    out_tiled = jax.block_until_ready(
        image_downsampling(coords, sidelength, seed=1234, target_block_elems=4096))
    assert bool(jnp.array_equal(out, out_tiled))

    # Ragged size exercises the padding path.
    coords2 = jax.random.uniform(jax.random.PRNGKey(1), (3, 100, 2), jnp.float32,
                                 minval=-1.0, maxval=1.0)
    out2 = jax.block_until_ready(image_downsampling(coords2, sidelength, seed=7))
    assert out2.shape == coords2.shape
    assert bool(jnp.all(jnp.abs(out2 - coords2) <= bound))

    # downsample=False path is the identity.
    out_id = image_downsampling(coords, sidelength, seed=0, downsample=False)
    assert bool(jnp.all(out_id == coords))

    print("KERNEL_OK")
</pallas_src>

<mosaic_0001>
module attributes {stable_mosaic.version = 11 : i64} {
  func.func @_downsample_kernel(%arg0: i32, %arg1: memref<1xi32, #tpu.memory_space<smem>>, %arg2: memref<32x512xf32, #tpu.memory_space<vmem>>, %arg3: memref<1x512xf32, #tpu.memory_space<vmem>>, %arg4: memref<32x512xf32, #tpu.memory_space<vmem>>) attributes {dimension_semantics = [#tpu.dimension_semantics<parallel>], iteration_bounds = array<i64: 1>, scalar_prefetch = 1 : i64, scratch_operands = 0 : i64, tpu.core_type = #tpu.core_type<tc>, window_params = [{transform_indices = @transform_0, window_bounds = array<i64: 32, 512>}, {pipeline_mode = #tpu.pipeline_mode<synchronous>, transform_indices = @transform_1, window_bounds = array<i64: 1, 512>}, {transform_indices = @transform_2, window_bounds = array<i64: 32, 512>}]} {
    %0 = tpu.iota {dimensions = array<i32: 0>} : vector<32x512xi32>
    %1 = tpu.iota {dimensions = array<i32: 1>} : vector<32x512xi32>
    %c16384_i32 = arith.constant 16384 : i32
    %2 = arith.muli %arg0, %c16384_i32 : i32
    %c512_i32 = arith.constant 512 : i32
    %3 = vector.broadcast %c512_i32 : i32 to vector<32x512xi32>
    %4 = arith.muli %0, %3 : vector<32x512xi32>
    %5 = vector.broadcast %2 : i32 to vector<32x512xi32>
    %6 = arith.addi %5, %4 : vector<32x512xi32>
    %7 = arith.addi %6, %1 : vector<32x512xi32>
    %c0 = arith.constant 0 : index
    %8 = memref.load %arg1[%c0] : memref<1xi32, #tpu.memory_space<smem>>
    %c16_i32 = arith.constant 16 : i32
    %9 = arith.shrsi %8, %c16_i32 : i32
    %c65535_i32 = arith.constant 65535 : i32
    %10 = arith.andi %9, %c65535_i32 : i32
    %11 = arith.xori %8, %10 : i32
    %c2146121005_i32 = arith.constant 2146121005 : i32
    %12 = arith.muli %11, %c2146121005_i32 : i32
    %c15_i32 = arith.constant 15 : i32
    %13 = arith.shrsi %12, %c15_i32 : i32
    %c131071_i32 = arith.constant 131071 : i32
    %14 = arith.andi %13, %c131071_i32 : i32
    %15 = arith.xori %12, %14 : i32
    %c-2073254261_i32 = arith.constant -2073254261 : i32
    %16 = arith.muli %15, %c-2073254261_i32 : i32
    %c16_i32_0 = arith.constant 16 : i32
    %17 = arith.shrsi %16, %c16_i32_0 : i32
    %c65535_i32_1 = arith.constant 65535 : i32
    %18 = arith.andi %17, %c65535_i32_1 : i32
    %19 = arith.xori %16, %18 : i32
    %20 = vector.broadcast %19 : i32 to vector<32x512xi32>
    %21 = arith.xori %7, %20 : vector<32x512xi32>
    %c16_i32_2 = arith.constant 16 : i32
    %22 = vector.broadcast %c16_i32_2 : i32 to vector<32x512xi32>
    %23 = arith.shrsi %21, %22 : vector<32x512xi32>
    %c65535_i32_3 = arith.constant 65535 : i32
    %24 = vector.broadcast %c65535_i32_3 : i32 to vector<32x512xi32>
    %25 = arith.andi %23, %24 : vector<32x512xi32>
    %26 = arith.xori %21, %25 : vector<32x512xi32>
    %c2146121005_i32_4 = arith.constant 2146121005 : i32
    %27 = vector.broadcast %c2146121005_i32_4 : i32 to vector<32x512xi32>
    %28 = arith.muli %26, %27 : vector<32x512xi32>
    %c15_i32_5 = arith.constant 15 : i32
    %29 = vector.broadcast %c15_i32_5 : i32 to vector<32x512xi32>
    %30 = arith.shrsi %28, %29 : vector<32x512xi32>
    %c131071_i32_6 = arith.constant 131071 : i32
    %31 = vector.broadcast %c131071_i32_6 : i32 to vector<32x512xi32>
    %32 = arith.andi %30, %31 : vector<32x512xi32>
    %33 = arith.xori %28, %32 : vector<32x512xi32>
    %c-2073254261_i32_7 = arith.constant -2073254261 : i32
    %34 = vector.broadcast %c-2073254261_i32_7 : i32 to vector<32x512xi32>
    %35 = arith.muli %33, %34 : vector<32x512xi32>
    %c16_i32_8 = arith.constant 16 : i32
    %36 = vector.broadcast %c16_i32_8 : i32 to vector<32x512xi32>
    %37 = arith.shrsi %35, %36 : vector<32x512xi32>
    %c65535_i32_9 = arith.constant 65535 : i32
    %38 = vector.broadcast %c65535_i32_9 : i32 to vector<32x512xi32>
    %39 = arith.andi %37, %38 : vector<32x512xi32>
    %40 = arith.xori %35, %39 : vector<32x512xi32>
    %c8_i32 = arith.constant 8 : i32
    %41 = vector.broadcast %c8_i32 : i32 to vector<32x512xi32>
    %42 = arith.shrsi %40, %41 : vector<32x512xi32>
    %c16777215_i32 = arith.constant 16777215 : i32
    %43 = vector.broadcast %c16777215_i32 : i32 to vector<32x512xi32>
    %44 = arith.andi %42, %43 : vector<32x512xi32>
    %45 = arith.sitofp %44 : vector<32x512xi32> to vector<32x512xf32>
    %cst = arith.constant 5.96046448E-8 : f32
    %46 = vector.broadcast %cst : f32 to vector<32x512xf32>
    %47 = arith.mulf %45, %46 : vector<32x512xf32>
    %c1_i32 = arith.constant 1 : i32
    %48 = vector.broadcast %c1_i32 : i32 to vector<32x512xi32>
    %49 = arith.andi %40, %48 : vector<32x512xi32>
    %50 = arith.sitofp %49 : vector<32x512xi32> to vector<32x512xf32>
    %cst_10 = arith.constant 2.000000e+00 : f32
    %51 = vector.broadcast %cst_10 : f32 to vector<32x512xf32>
    %52 = arith.mulf %51, %50 : vector<32x512xf32>
    %cst_11 = arith.constant 1.000000e+00 : f32
    %53 = vector.broadcast %cst_11 : f32 to vector<32x512xf32>
    %54 = arith.subf %53, %52 : vector<32x512xf32>
    %55 = math.sqrt %47 : vector<32x512xf32>
    %cst_12 = arith.constant 1.000000e+00 : f32
    %56 = vector.broadcast %cst_12 : f32 to vector<32x512xf32>
    %57 = arith.subf %55, %56 : vector<32x512xf32>
    %58 = arith.mulf %54, %57 : vector<32x512xf32>
    %c0_13 = arith.constant 0 : index
    %c0_14 = arith.constant 0 : index
    %59 = vector.load %arg3[%c0_13, %c0_14] : memref<1x512xf32, #tpu.memory_space<vmem>>, vector<1x512xf32>
    %60 = vector.broadcast %59 : vector<1x512xf32> to vector<32x512xf32>
    %61 = arith.mulf %58, %60 : vector<32x512xf32>
    %c0_15 = arith.constant 0 : index
    %c0_16 = arith.constant 0 : index
    %62 = vector.load %arg2[%c0_15, %c0_16] : memref<32x512xf32, #tpu.memory_space<vmem>>, vector<32x512xf32>
    %63 = arith.addf %62, %61 : vector<32x512xf32>
    %c0_17 = arith.constant 0 : index
    %c0_18 = arith.constant 0 : index
    %64 = vector.load %arg4[%c0_17, %c0_18] : memref<32x512xf32, #tpu.memory_space<vmem>>, vector<32x512xf32>
    tpu.vector_store %arg4[%c0_17, %c0_18], %63 {strides = array<i32>} : memref<32x512xf32, #tpu.memory_space<vmem>>, vector<32x512xf32>,
    return
  }
  func.func @transform_0(%arg0: i32, %arg1: memref<1xi32, #tpu.memory_space<smem>>) -> (i32, i32) {
    %c0_i32 = arith.constant 0 : i32
    %c0_i32_0 = arith.constant 0 : i32
    return %arg0, %c0_i32 : i32, i32
  }
  func.func @transform_1(%arg0: i32, %arg1: memref<1xi32, #tpu.memory_space<smem>>) -> (i32, i32) {
    %c0_i32 = arith.constant 0 : i32
    %c0_i32_0 = arith.constant 0 : i32
    %c0_i32_1 = arith.constant 0 : i32
    return %c0_i32, %c0_i32_0 : i32, i32
  }
  func.func @transform_2(%arg0: i32, %arg1: memref<1xi32, #tpu.memory_space<smem>>) -> (i32, i32) {
    %c0_i32 = arith.constant 0 : i32
    %c0_i32_0 = arith.constant 0 : i32
    return %arg0, %c0_i32 : i32, i32
  }
}

</mosaic_0001>

<bundles_post_ra>
// kernel: tpu_custom_call.1
= control target key start
LH: loop header
LB: loop body
LE: loop exit
PB: predicated region body
PF: predicated region fallthrough
CT: control target
= control target key end

     0   :  { %9 = vsyncpa [#allocation5], 0  ;;  %s1176_s0 = inlined_call_operand.<no memory space> [shape: s32[1], index: 0, kind: input, shape index: {}]   ;;  %s1177_s1 = inlined_call_operand.hbm [shape: f32[32,512], index: 1, kind: input, shape index: {}]   ;;  %s1178_s2 = inlined_call_operand.vmem [shape: f32[1,512], index: 2, kind: input, shape index: {}]   ;;  %s1179_s3 = inlined_call_operand.hbm [shape: f32[32,512], index: 3, kind: output, shape index: {}]  }
   0x1   :  { %10 = vsyncpa [#allocation6], 0  ;;  %s808_s12 = smov [#allocation4]   ;;  %s760_s16 = scalar_lea.hbm %s1177_s1, 2048 }
   0x2   :  { %s16_s13 = sshll.u32 %s808_s12, 4  ;;  %p761_p0 = scmp.ne.s32.totalorder %s1177_s1, %s760_s16  ;;  %s17_s13 = int_to_ptr.vmem [resolvable:$true] %s16_s13 }
   0x3   :  { %p764_p1 = scmp.lt.u32.totalorder %s760_s16, %s1177_s1 }
   0x5   :  { %p766_p2 = pnand %p764_p1, %p761_p0 }
   0x7   :  { %769 = shalt.err (!%p766_p2)
}
   0x8   :  { %s770_s21 = scalar_lea.vmem %s17_s13, 2048  ;;  %p775_p4 = scmp.lt.s32.totalorder %s17_s13, %s17_s13 }
   0x9   :  { %p771_p3 = scmp.ne.s32.totalorder %s17_s13, %s770_s21  ;;  %p776_p5 = scmp.lt.s32.totalorder %s770_s21, %s770_s21 }
   0xb   :  { %p777_p6 = por %p776_p5, %p775_p4 }
   0xd   :  { %p778_p7 = pnand %p777_p6, %p771_p3 }
   0xf   :  { %781 = shalt.err (!%p778_p7)
}
  0x10   :  { %s809_s22 = smov 512   ;;  %s810_s23 = smov 32  }
  0x11   :  { %22 = dma.hbm_to_vmem [thread:$0]  %s1177_s1, 2048, %s17_s13, [#allocation5], %s809_s22, %s809_s22, %s810_s23  }
  0x12   :  { %804 = dma.done.wait [#allocation5], 2048  }
  0x13   :  { %805 = vsyncadd [#allocation5], 4294965248  ;;  %v28_v0 = vlaneseq  ;;  %s65_s28 = sshra.s32 %s1176_s0, 16  ;;  %v541_v10 = vld [vmem:[%s1178_s2] sm:$0xf]  ;;  %s811_s13 = smov [#allocation7]  }
  0x14   :  { %s66_s29 = sand.u32 65535, %s65_s28  ;;  %s632_s14 = sshll.u32 %s811_s13, 4  ;;  %s633_s14 = int_to_ptr.vmem [resolvable:$true] %s632_s14 }
  0x15   :  { %v850_v1 = vshrl.u32 %v28_v0, 7  ;;  %v852_v2 = vand.u32 127, %v28_v0  ;;  %s67_s5 = sxor.u32 %s66_s29, %s1176_s0  ;;  %s782_s15 = scalar_lea.vmem %s633_s14, 2048 }
  0x16   :  { %s68_s6 = smul.u32 2146121005, %s67_s5  ;;  %p783_p8 = scmp.ne.s32.totalorder %s633_s14, %s782_s15 }
  0x17   :  { %v39_v3 = vmul.u32 512, %v850_v1  ;;  %v859_v4 = vadd.s32 128, %v852_v2  ;;  %v862_v5 = vadd.s32 256, %v852_v2  ;;  %v865_v6 = vadd.s32 384, %v852_v2  ;;  %p787_p9 = scmp.lt.s32.totalorder %s633_s14, %s633_s14  ;;  %p788_p10 = scmp.lt.s32.totalorder %s782_s15, %s782_s15 }
  0x18   :  { %s69_s1 = sshra.s32 %s68_s6, 15  ;;  %v30_v7 = vadd.s32 8, %v850_v1  ;;  %v545_v8 = vsub.s32 0, %v850_v1  ;;  %v549_v9 = vsub.s32 1, %v850_v1  ;;  %v553_v11 = vsub.s32 2, %v850_v1 }
  0x19   :  { %s70_s7 = sand.u32 131071, %s69_s1  ;;  %v31_v13 = vadd.s32 16, %v850_v1  ;;  %v32_v14 = vadd.s32 24, %v850_v1  ;;  %v48_v15 = vadd.s32 %v39_v3, %v852_v2  ;;  %v49_v16 = vadd.s32 %v39_v3, %v859_v4  ;;  %p789_p11 = por %p788_p10, %p787_p9 }
  0x1a   :  { %s71_s8 = sxor.u32 %s70_s7, %s68_s6  ;;  %v40_v12 = vmul.u32 512, %v30_v7  ;;  %v50_v17 = vadd.s32 %v39_v3, %v862_v5  ;;  %v51_v18 = vadd.s32 %v39_v3, %v865_v6  ;;  %v884_v23 = vrot.slane %v541_v10, %v545_v8 }
  0x1b   :  { %s72_s9 = smul.u32 2221713035, %s71_s8  ;;  %v886_v24 = vrot.slane %v541_v10, %v549_v9  ;;  %v557_v25 = vsub.s32 3, %v850_v1  ;;  %v891_v27 = vrot.slane %v541_v10, %v553_v11  ;;  %v41_v28 = vmul.u32 512, %v31_v13  ;;  %p790_p12 = pnand %p789_p11, %p783_p8 }
  0x1c   :  { %v52_v19 = vadd.s32 %v40_v12, %v852_v2  ;;  %v53_v20 = vadd.s32 %v40_v12, %v859_v4  ;;  %v54_v21 = vadd.s32 %v40_v12, %v862_v5  ;;  %v55_v22 = vadd.s32 %v40_v12, %v865_v6 }
  0x1d   :  { %s73_s11 = sshra.s32 %s72_s9, 16  ;;  %v893_v29 = vmul.u32 512, %v32_v14  ;;  %v903_v56 = vrot.slane %v541_v10, %v557_v25  ;;  %v56_v57 = vadd.s32 %v41_v28, %v852_v2  ;;  %v57_v60 = vadd.s32 %v41_v28, %v859_v4 }
  0x1e   :  { %s74_s12 = sand.u32 65535, %s73_s11  ;;  %v908_v61 = vadd.s32 %v41_v28, %v862_v5 }
  0x1f   :  { %s75_s2 = sxor.u32 %s74_s12, %s72_s9 }
  0x20   :  { %v889_v26 = vstv %s75_s2 }
  0x21   :  { %v77_v30 = vxor.u32 %v889_v26, %v48_v15  ;;  %v78_v31 = vxor.u32 %v889_v26, %v49_v16  ;;  %v79_v32 = vxor.u32 %v889_v26, %v50_v17  ;;  %v80_v33 = vxor.u32 %v889_v26, %v51_v18 }
  0x22   :  { %v81_v34 = vxor.u32 %v889_v26, %v52_v19  ;;  %v82_v35 = vxor.u32 %v889_v26, %v53_v20  ;;  %v83_v36 = vxor.u32 %v889_v26, %v54_v21  ;;  %v84_v37 = vxor.u32 %v889_v26, %v55_v22 }
  0x23   :  { %v644_v38 = vshrl.u32 %v77_v30, 16  ;;  %v645_v39 = vshrl.u32 %v78_v31, 16  ;;  %v646_v40 = vshrl.u32 %v79_v32, 16  ;;  %v647_v41 = vshrl.u32 %v80_v33, 16 }
  0x24   :  { %v648_v42 = vshrl.u32 %v81_v34, 16  ;;  %v649_v43 = vshrl.u32 %v82_v35, 16  ;;  %v650_v44 = vshrl.u32 %v83_v36, 16  ;;  %v651_v45 = vshrl.u32 %v84_v37, 16 }
  0x25   :  { %v125_v46 = vxor.u32 %v644_v38, %v77_v30  ;;  %v126_v47 = vxor.u32 %v645_v39, %v78_v31  ;;  %v127_v48 = vxor.u32 %v646_v40, %v79_v32  ;;  %v128_v49 = vxor.u32 %v647_v41, %v80_v33 }
  0x26   :  { %v129_v50 = vxor.u32 %v648_v42, %v81_v34  ;;  %v130_v51 = vxor.u32 %v649_v43, %v82_v35  ;;  %v131_v52 = vxor.u32 %v650_v44, %v83_v36  ;;  %v132_v53 = vxor.u32 %v651_v45, %v84_v37 }
  0x27   :  { %v141_v54 = vmul.u32 2146121005, %v125_v46  ;;  %v142_v55 = vmul.u32 2146121005, %v126_v47  ;;  %v59_v17 = vadd.s32 %v41_v28, %v865_v6  ;;  %v919_v34 = vadd.s32 %v893_v29, %v852_v2 }
  0x28   :  { %v143_v58 = vmul.u32 2146121005, %v127_v48  ;;  %v144_v59 = vmul.u32 2146121005, %v128_v49  ;;  %v923_v28 = vadd.s32 %v893_v29, %v859_v4  ;;  %v926_v37 = vxor.u32 %v889_v26, %v56_v57 }
  0x29   :  { %v660_v62 = vshrl.u32 %v141_v54, 15  ;;  %v661_v63 = vshrl.u32 %v142_v55, 15  ;;  %v145_v0 = vmul.u32 2146121005, %v129_v50  ;;  %v146_v1 = vmul.u32 2146121005, %v130_v51 }
  0x2a   :  { %v662_v3 = vshrl.u32 %v143_v58, 15  ;;  %v663_v7 = vshrl.u32 %v144_v59, 15  ;;  %v147_v8 = vmul.u32 2146121005, %v131_v52  ;;  %v148_v9 = vmul.u32 2146121005, %v132_v53 }
  0x2b   :  { %v189_v11 = vxor.u32 %v660_v62, %v141_v54  ;;  %v190_v10 = vxor.u32 %v661_v63, %v142_v55  ;;  %v664_v12 = vshrl.u32 %v145_v0, 15  ;;  %v665_v13 = vshrl.u32 %v146_v1, 15 }
  0x2c   :  { %v191_v14 = vxor.u32 %v662_v3, %v143_v58  ;;  %v192_v15 = vxor.u32 %v663_v7, %v144_v59  ;;  %v666_v16 = vshrl.u32 %v147_v8, 15  ;;  %v667_v21 = vshrl.u32 %v148_v9, 15 }
  0x2d   :  { %v205_v18 = vmul.u32 2221713035, %v189_v11  ;;  %v206_v19 = vmul.u32 2221713035, %v190_v10  ;;  %v911_v20 = vxor.u32 %v664_v12, %v145_v0  ;;  %v913_v30 = vxor.u32 %v665_v13, %v146_v1 }
  0x2e   :  { %v207_v22 = vmul.u32 2221713035, %v191_v14  ;;  %v208_v25 = vmul.u32 2221713035, %v192_v15  ;;  %v915_v31 = vxor.u32 %v666_v16, %v147_v8  ;;  %v929_v38 = vxor.u32 %v889_v26, %v57_v60 }
  0x2f   :  { %v676_v32 = vshrl.u32 %v205_v18, 16  ;;  %v677_v33 = vshrl.u32 %v206_v19, 16  ;;  %v209_v41 = vmul.u32 2221713035, %v911_v20  ;;  %v196_v42 = vxor.u32 %v667_v21, %v148_v9 }
  0x30   :  { %v678_v35 = vshrl.u32 %v207_v22, 16  ;;  %v679_v36 = vshrl.u32 %v208_v25, 16  ;;  %v210_v44 = vmul.u32 2221713035, %v913_v30  ;;  %v211_v4 = vmul.u32 2221713035, %v915_v31 }
  0x31   :  { %v253_v39 = vxor.u32 %v676_v32, %v205_v18  ;;  %v254_v40 = vxor.u32 %v677_v33, %v206_v19  ;;  %v212_v62 = vmul.u32 2221713035, %v196_v42  ;;  %v946_v9 = vxor.u32 %v889_v26, %v908_v61 }
  0x32   :  { %v255_v43 = vxor.u32 %v678_v35, %v207_v22  ;;  %v256_v2 = vxor.u32 %v679_v36, %v208_v25  ;;  %v949_v11 = vxor.u32 %v889_v26, %v59_v17  ;;  %v680_v13 = vshrl.u32 %v209_v41, 16 }
  0x33   :  { %v692_v45 = vshrl.u32 %v253_v39, 8  ;;  %v333_v46 = vand.u32 1, %v253_v39  ;;  %v693_v47 = vshrl.u32 %v254_v40, 8  ;;  %v334_v48 = vand.u32 1, %v254_v40 }
  0x34   :  { %v694_v49 = vshrl.u32 %v255_v43, 8  ;;  %v335_v50 = vand.u32 1, %v255_v43  ;;  %v695_v51 = vshrl.u32 %v256_v2, 8  ;;  %v336_v52 = vand.u32 1, %v256_v2 }
  0x35   :  { %v301_v53 = vcvt.s32.f32 %v692_v45  ;;  %v349_v54 = vcvt.s32.f32 %v333_v46  ;;  %v302_v55 = vcvt.s32.f32 %v693_v47  ;;  %v350_v57 = vcvt.s32.f32 %v334_v48 }
  0x36   :  { %v303_v58 = vcvt.s32.f32 %v694_v49  ;;  %v351_v59 = vcvt.s32.f32 %v335_v50  ;;  %v304_v60 = vcvt.s32.f32 %v695_v51  ;;  %v352_v3 = vcvt.s32.f32 %v336_v52 }
  0x37   :  { %v934_v63 = vmul.f32 5.9604645e-08, %v301_v53  ;;  %v936_v0 = vmul.f32 2.0, %v349_v54  ;;  %v938_v1 = vmul.f32 5.9604645e-08, %v302_v55  ;;  %v940_v7 = vmul.f32 2.0, %v350_v57 }
  0x38   :  { %v942_v8 = vmul.f32 5.9604645e-08, %v303_v58  ;;  %v952_v10 = vmul.f32 2.0, %v351_v59  ;;  %v954_v12 = vmul.f32 5.9604645e-08, %v304_v60  ;;  %v681_v14 = vshrl.u32 %v210_v44, 16 }
  0x39   :  { %728 = vrsqrt.f32 %v934_v63  ;;  %v682_v15 = vshrl.u32 %v211_v4, 16  ;;  %v683_v16 = vshrl.u32 %v212_v62, 16  ;;  %v381_v18 = vsub.f32 1.0, %v936_v0 }
  0x3a   :  { %730 = vrsqrt.f32 %v938_v1  ;;  %vm399_vm0 = vcmp.eq.f32.partialorder %v934_v63, inf  ;;  %v960_v61 = vmul.f32 2.0, %v352_v3  ;;  %vm401_vm1 = vcmp.eq.f32.partialorder %v934_v63, 0.0 }
  0x3b   :  { %732 = vrsqrt.f32 %v942_v8  ;;  %v402_v17 = vand.u32 2147483648, %v934_v63  ;;  %v382_v19 = vsub.f32 1.0, %v940_v7  ;;  %vm406_vm2 = vcmp.eq.f32.partialorder %v938_v1, inf  ;;  %v581_v7 = vld [vmem:[#allocation4 + $0x10] sm:$0xff] }
  0x3c   :  { %vm408_vm3 = vcmp.eq.f32.partialorder %v938_v1, 0.0  ;;  %v409_v20 = vand.u32 2147483648, %v938_v1  ;;  %v383_v21 = vsub.f32 1.0, %v952_v10  ;;  %vm413_vm4 = vcmp.eq.f32.partialorder %v942_v8, inf }
  0x3d   :  { %734 = vrsqrt.f32 %v954_v12  ;;  %vm415_vm5 = vcmp.eq.f32.partialorder %v942_v8, 0.0  ;;  %v257_v22 = vxor.u32 %v680_v13, %v209_v41  ;;  %v258_v25 = vxor.u32 %v681_v14, %v210_v44 }
  0x3e   :  { %v259_v30 = vxor.u32 %v682_v15, %v211_v4  ;;  %v260_v31 = vxor.u32 %v683_v16, %v212_v62  ;;  %v416_v32 = vand.u32 2147483648, %v942_v8  ;;  %v384_v33 = vsub.f32 1.0, %v960_v61 }
  0x3f   :  { %vm420_vm6 = vcmp.eq.f32.partialorder %v954_v12, inf  ;;  %v423_v35 = vand.u32 2147483648, %v954_v12  ;;  %vm422_vm7 = vcmp.eq.f32.partialorder %v954_v12, 0.0  ;;  %v696_v36 = vshrl.u32 %v257_v22, 8 }
  0x40   :  { %v337_v39 = vand.u32 1, %v257_v22  ;;  %v697_v40 = vshrl.u32 %v258_v25, 8  ;;  %v338_v42 = vand.u32 1, %v258_v25  ;;  %v698_v43 = vshrl.u32 %v259_v30, 8 }
  0x41   :  { %v339_v2 = vand.u32 1, %v259_v30  ;;  %v699_v41 = vshrl.u32 %v260_v31, 8  ;;  %v340_v44 = vand.u32 1, %v260_v31  ;;  %v305_v4 = vcvt.s32.f32 %v696_v36 }
  0x42   :  { %v353_v45 = vcvt.s32.f32 %v337_v39  ;;  %v306_v46 = vcvt.s32.f32 %v697_v40  ;;  %v652_v47 = vshrl.u32 %v926_v37, 16  ;;  %v354_v49 = vcvt.s32.f32 %v338_v42 }
  0x43   :  { %v729_v48 = vpop.eup %728  ;;  %v307_v50 = vcvt.s32.f32 %v698_v43  ;;  %v653_v51 = vshrl.u32 %v929_v38, 16  ;;  %v654_v52 = vshrl.u32 %v946_v9, 16  ;;  %v981_v55 = vmul.f32 5.9604645e-08, %v305_v4 }
  0x44   :  { %v731_v53 = vpop.eup %730  ;;  %v398_v54 = vmul.f32 %v729_v48, %v934_v63  ;;  %v355_v57 = vcvt.s32.f32 %v339_v2  ;;  %v655_v58 = vshrl.u32 %v949_v11, 16  ;;  %v985_v62 = vmul.f32 2.0, %v353_v45 }
  0x45   :  { %v733_v59 = vpop.eup %732  ;;  %v405_v60 = vmul.f32 %v731_v53, %v938_v1  ;;  %v308_v3 = vcvt.s32.f32 %v699_v41  ;;  %v356_v13 = vcvt.s32.f32 %v340_v44  ;;  %736 = vrsqrt.f32 %v981_v55 }
  0x46   :  { %v400_v14 = vsel %vm399_vm0, %v934_v63, %v398_v54  ;;  %v412_v15 = vmul.f32 %v733_v59, %v942_v8  ;;  %v992_v16 = vmul.f32 5.9604645e-08, %v306_v46  ;;  %v999_v31 = vmul.f32 2.0, %v354_v49 }
  0x47   :  { %v735_v22 = vpop.eup %734  ;;  %v403_v25 = vsel %vm401_vm1, %v402_v17, %v400_v14  ;;  %v407_v30 = vsel %vm406_vm2, %v938_v1, %v405_v60  ;;  %v1001_v36 = vmul.f32 5.9604645e-08, %v307_v50  ;;  %v385_v2 = vsub.f32 1.0, %v985_v62 }
  0x48   :  { %v708_v39 = vadd.f32 -1.0, %v403_v25  ;;  %v410_v40 = vsel %vm408_vm3, %v409_v20, %v407_v30  ;;  %v414_v42 = vsel %vm413_vm4, %v942_v8, %v412_v15  ;;  %v419_v43 = vmul.f32 %v735_v22, %v954_v12  ;;  %v579_v20 = vld [vmem:[#allocation4] sm:$0xff] }
  0x49   :  { %v709_v63 = vadd.f32 -1.0, %v410_v40  ;;  %v417_v17 = vsel %vm415_vm5, %v416_v32, %v414_v42  ;;  %v1012_v41 = vmul.f32 2.0, %v355_v57  ;;  %738 = vrsqrt.f32 %v992_v16 }
  0x4a   :  { %v525_v44 = vmul.f32 %v708_v39, %v381_v18  ;;  %v710_v4 = vadd.f32 -1.0, %v417_v17  ;;  %v421_v1 = vsel %vm420_vm6, %v954_v12, %v419_v43  ;;  %vm427_vm8 = vcmp.eq.f32.partialorder %v981_v55, inf  ;;  %v580_v18 = vld [vmem:[#allocation4 + $0x8] sm:$0xff] }
  0x4b   :  { %v526_v45 = vmul.f32 %v709_v63, %v382_v19  ;;  %v424_v8 = vsel %vm422_vm7, %v423_v35, %v421_v1  ;;  %vm429_vm9 = vcmp.eq.f32.partialorder %v981_v55, 0.0  ;;  %v430_v48 = vand.u32 2147483648, %v981_v55 }
  0x4c   :  { %v563_v0 = vmul.f32 %v884_v23, %v525_v44  ;;  %v527_v32 = vmul.f32 %v710_v4, %v383_v21  ;;  %v711_v46 = vadd.f32 -1.0, %v424_v8  ;;  %v386_v19 = vsub.f32 1.0, %v999_v31  ;;  %v582_v21 = vld [vmem:[#allocation4 + $0x18] sm:$0xff] }
  0x4d   :  { %v564_v49 = vmul.f32 %v886_v24, %v526_v45  ;;  %vm434_vm10 = vcmp.eq.f32.partialorder %v992_v16, inf  ;;  %740 = vrsqrt.f32 %v1001_v36  ;;  %vm436_vm11 = vcmp.eq.f32.partialorder %v992_v16, 0.0 }
  0x4e   :  { %v595_v12 = vadd.f32 %v579_v20, %v563_v0  ;;  %v565_v35 = vmul.f32 %v891_v27, %v527_v32  ;;  %v528_v50 = vmul.f32 %v711_v46, %v384_v33  ;;  %v437_v53 = vand.u32 2147483648, %v992_v16  ;;  %v583_v20 = vld [vmem:[#allocation4 + $0x20] sm:$0xff] }
  0x4f   :  { %v596_v10 = vadd.f32 %v580_v18, %v564_v49  ;;  %v1039_v54 = vmul.f32 5.9604645e-08, %v308_v3  ;;  %v1041_v57 = vmul.f32 2.0, %v356_v13  ;;  %v737_v59 = vpop.eup %736  ;;  %v133_v61 = vxor.u32 %v652_v47, %v926_v37 }
  0x50   :  { %611 = vst [vmem:[#allocation7] sm:$0xff] %v595_v12  ;;  %v597_v60 = vadd.f32 %v581_v7, %v565_v35  ;;  %v566_v14 = vmul.f32 %v903_v56, %v528_v50  ;;  %v134_v33 = vxor.u32 %v653_v51, %v929_v38  ;;  %v426_v15 = vmul.f32 %v737_v59, %v981_v55 }
  0x51   :  { %612 = vst [vmem:[#allocation7 + $0x8] sm:$0xff] %v596_v10  ;;  %v387_v22 = vsub.f32 1.0, %v1012_v41  ;;  %vm441_vm12 = vcmp.eq.f32.partialorder %v1001_v36, inf  ;;  %742 = vrsqrt.f32 %v1039_v54  ;;  %vm443_vm13 = vcmp.eq.f32.partialorder %v1001_v36, 0.0 }
  0x52   :  { %613 = vst [vmem:[#allocation7 + $0x10] sm:$0xff] %v597_v60  ;;  %v598_v3 = vadd.f32 %v582_v21, %v566_v14  ;;  %v444_v13 = vand.u32 2147483648, %v1001_v36  ;;  %v149_v25 = vmul.u32 2146121005, %v133_v61  ;;  %v428_v37 = vsel %vm427_vm8, %v981_v55, %v426_v15  ;;  %v584_v21 = vld [vmem:[#allocation4 + $0x28] sm:$0xff] }
  0x53   :  { %v150_v38 = vmul.u32 2146121005, %v134_v33  ;;  %v135_v47 = vxor.u32 %v654_v52, %v946_v9  ;;  %v136_v51 = vxor.u32 %v655_v58, %v949_v11  ;;  %v739_v30 = vpop.eup %738  ;;  %v431_v39 = vsel %vm429_vm9, %v430_v48, %v428_v37  ;;  %v585_v37 = vld [vmem:[#allocation4 + $0x30] sm:$0xff] }
  0x54   :  { %614 = vst [vmem:[#allocation7 + $0x18] sm:$0xff] %v598_v3  ;;  %v388_v40 = vsub.f32 1.0, %v1041_v57  ;;  %vm448_vm14 = vcmp.eq.f32.partialorder %v1039_v54, inf  ;;  %v668_v42 = vshrl.u32 %v149_v25, 15  ;;  %v712_v43 = vadd.f32 -1.0, %v431_v39 }
  0x55   :  { %v433_v63 = vmul.f32 %v739_v30, %v992_v16  ;;  %v669_v17 = vshrl.u32 %v150_v38, 15  ;;  %v151_v41 = vmul.u32 2146121005, %v135_v47  ;;  %vm450_vm15 = vcmp.eq.f32.partialorder %v1039_v54, 0.0 }
  0x56   :  { %v197_v9 = vxor.u32 %v668_v42, %v149_v25  ;;  %v152_v52 = vmul.u32 2146121005, %v136_v51  ;;  %v89_v11 = vxor.u32 %v889_v26, %v919_v34  ;;  %v529_v55 = vmul.f32 %v712_v43, %v385_v2 }
  0x57   :  { %v741_v58 = vpop.eup %740  ;;  %v435_v44 = vsel %vm434_vm10, %v992_v16, %v433_v63  ;;  %v198_v4 = vxor.u32 %v669_v17, %v150_v38  ;;  %v670_v1 = vshrl.u32 %v151_v41, 15  ;;  %v451_v48 = vand.u32 2147483648, %v1039_v54 }
  0x58   :  { %v438_v45 = vsel %vm436_vm11, %v437_v53, %v435_v44  ;;  %v440_v8 = vmul.f32 %v741_v58, %v1001_v36  ;;  %v213_v0 = vmul.u32 2221713035, %v197_v9  ;;  %v671_v18 = vshrl.u32 %v152_v52, 15  ;;  %v586_v58 = vld [vmem:[#allocation4 + $0x38] sm:$0xff] }
  0x59   :  { %v567_v34 = vmul.f32 %v884_v23, %v529_v55  ;;  %v713_v32 = vadd.f32 -1.0, %v438_v45  ;;  %v214_v46 = vmul.u32 2221713035, %v198_v4  ;;  %v199_v62 = vxor.u32 %v670_v1, %v151_v41 }
  0x5a   :  { %v442_v2 = vsel %vm441_vm12, %v1001_v36, %v440_v8  ;;  %v684_v49 = vshrl.u32 %v213_v0, 16  ;;  %v200_v7 = vxor.u32 %v671_v18, %v152_v52  ;;  %v656_v14 = vshrl.u32 %v89_v11, 16 }
  0x5b   :  { %v743_v12 = vpop.eup %742  ;;  %v599_v16 = vadd.f32 %v583_v20, %v567_v34  ;;  %v530_v35 = vmul.f32 %v713_v32, %v386_v19  ;;  %v445_v50 = vsel %vm443_vm13, %v444_v13, %v442_v2  ;;  %v685_v10 = vshrl.u32 %v214_v46, 16 }
  0x5c   :  { %v714_v53 = vadd.f32 -1.0, %v445_v50  ;;  %v447_v59 = vmul.f32 %v743_v12, %v1039_v54  ;;  %v261_v60 = vxor.u32 %v684_v49, %v213_v0  ;;  %v215_v15 = vmul.u32 2221713035, %v199_v62 }
  0x5d   :  { %615 = vst [vmem:[#allocation7 + $0x20] sm:$0xff] %v599_v16  ;;  %v568_v61 = vmul.f32 %v886_v24, %v530_v35  ;;  %v262_v33 = vxor.u32 %v685_v10, %v214_v46  ;;  %v216_v3 = vmul.u32 2221713035, %v200_v7  ;;  %v90_v19 = vxor.u32 %v889_v26, %v923_v28 }
  0x5e   :  { %v531_v25 = vmul.f32 %v714_v53, %v387_v22  ;;  %v449_v31 = vsel %vm448_vm14, %v1039_v54, %v447_v59  ;;  %v700_v36 = vshrl.u32 %v261_v60, 8  ;;  %v341_v47 = vand.u32 1, %v261_v60 }
  0x5f   :  { %v600_v13 = vadd.f32 %v584_v21, %v568_v61  ;;  %v452_v38 = vsel %vm450_vm15, %v451_v48, %v449_v31  ;;  %v701_v51 = vshrl.u32 %v262_v33, 8  ;;  %v137_v22 = vxor.u32 %v656_v14, %v89_v11 }
  0x60   :  { %v569_v30 = vmul.f32 %v891_v27, %v531_v25  ;;  %v715_v39 = vadd.f32 -1.0, %v452_v38  ;;  %v309_v42 = vcvt.s32.f32 %v700_v36  ;;  %v342_v63 = vand.u32 1, %v262_v33 }
  0x61   :  { %616 = vst [vmem:[#allocation7 + $0x28] sm:$0xff] %v600_v13  ;;  %v310_v43 = vcvt.s32.f32 %v701_v51  ;;  %v686_v17 = vshrl.u32 %v215_v15, 16  ;;  %v687_v41 = vshrl.u32 %v216_v3, 16  ;;  %v62_v54 = vadd.s32 %v893_v29, %v862_v5 }
  0x62   :  { %v601_v9 = vadd.f32 %v585_v37, %v569_v30  ;;  %v532_v28 = vmul.f32 %v715_v39, %v388_v40  ;;  %v1100_v52 = vmul.f32 5.9604645e-08, %v309_v42  ;;  %v357_v55 = vcvt.s32.f32 %v341_v47 }
  0x63   :  { %v1104_v44 = vmul.f32 5.9604645e-08, %v310_v43  ;;  %v263_v4 = vxor.u32 %v686_v17, %v215_v15  ;;  %v264_v11 = vxor.u32 %v687_v41, %v216_v3  ;;  %v153_v20 = vmul.u32 2146121005, %v137_v22 }
  0x64   :  { %617 = vst [vmem:[#allocation7 + $0x30] sm:$0xff] %v601_v9  ;;  %v570_v1 = vmul.f32 %v903_v56, %v532_v28  ;;  %744 = vrsqrt.f32 %v1100_v52  ;;  %v657_v45 = vshrl.u32 %v90_v19, 16  ;;  %v358_v57 = vcvt.s32.f32 %v342_v63 }
  0x65   :  { %746 = vrsqrt.f32 %v1104_v44  ;;  %v373_v8 = vmul.f32 2.0, %v357_v55  ;;  %v702_v0 = vshrl.u32 %v263_v4, 8  ;;  %v703_v5 = vshrl.u32 %v264_v11, 8 }
  0x66   :  { %v602_v40 = vadd.f32 %v586_v58, %v570_v1  ;;  %v672_v18 = vshrl.u32 %v153_v20, 15  ;;  %v138_v34 = vxor.u32 %v657_v45, %v90_v19  ;;  %v91_v32 = vxor.u32 %v889_v26, %v62_v54 }
  0x67   :  { %v63_v46 = vadd.s32 %v893_v29, %v865_v6  ;;  %v374_v62 = vmul.f32 2.0, %v358_v57  ;;  %v311_v2 = vcvt.s32.f32 %v702_v0  ;;  %v343_v48 = vand.u32 1, %v263_v4 }
  0x68   :  { %618 = vst [vmem:[#allocation7 + $0x38] sm:$0xff] %v602_v40  ;;  %v312_v49 = vcvt.s32.f32 %v703_v5  ;;  %v201_v7 = vxor.u32 %v672_v18, %v153_v20  ;;  %v154_v12 = vmul.u32 2146121005, %v138_v34  ;;  %v658_v16 = vshrl.u32 %v91_v32, 16  ;;  %v588_v40 = vld [vmem:[#allocation4 + $0x48] sm:$0xff] }
  0x69   :  { %v92_v35 = vxor.u32 %v889_v26, %v63_v46  ;;  %v389_v50 = vsub.f32 1.0, %v373_v8  ;;  %v1113_v10 = vmul.f32 5.9604645e-08, %v311_v2  ;;  %v344_v53 = vand.u32 1, %v264_v11  ;;  %v587_v11 = vld [vmem:[#allocation4 + $0x40] sm:$0xff] }
  0x6a   :  { %v1115_v21 = vmul.f32 5.9604645e-08, %v312_v49  ;;  %vm455_vm0 = vcmp.eq.f32.partialorder %v1100_v52, inf  ;;  %v217_v59 = vmul.u32 2221713035, %v201_v7  ;;  %v673_v60 = vshrl.u32 %v154_v12, 15 }
  0x6b   :  { %v139_v6 = vxor.u32 %v658_v16, %v91_v32  ;;  %vm457_vm1 = vcmp.eq.f32.partialorder %v1100_v52, 0.0  ;;  %v359_v29 = vcvt.s32.f32 %v343_v48  ;;  %748 = vrsqrt.f32 %v1113_v10 }
  0x6c   :  { %v659_v14 = vshrl.u32 %v92_v35, 16  ;;  %v458_v26 = vand.u32 2147483648, %v1100_v52  ;;  %v390_v33 = vsub.f32 1.0, %v374_v62  ;;  %vm462_vm2 = vcmp.eq.f32.partialorder %v1104_v44, inf }
  0x6d   :  { %750 = vrsqrt.f32 %v1115_v21  ;;  %v465_v25 = vand.u32 2147483648, %v1104_v44  ;;  %v360_v31 = vcvt.s32.f32 %v344_v53  ;;  %v688_v36 = vshrl.u32 %v217_v59, 16 }
  0x6e   :  { %v745_v61 = vpop.eup %744  ;;  %vm464_vm3 = vcmp.eq.f32.partialorder %v1104_v44, 0.0  ;;  %v202_v13 = vxor.u32 %v673_v60, %v154_v12  ;;  %v155_v37 = vmul.u32 2146121005, %v139_v6  ;;  %v375_v47 = vmul.f32 2.0, %v359_v29 }
  0x6f   :  { %v747_v15 = vpop.eup %746  ;;  %v454_v3 = vmul.f32 %v745_v61, %v1100_v52  ;;  %v265_v51 = vxor.u32 %v688_v36, %v217_v59  ;;  %v140_v30 = vxor.u32 %v659_v14, %v92_v35  ;;  %v376_v41 = vmul.f32 2.0, %v360_v31  ;;  %v590_v36 = vld [vmem:[#allocation4 + $0x58] sm:$0xff] }
  0x70   :  { %v461_v19 = vmul.f32 %v747_v15, %v1104_v44  ;;  %v218_v22 = vmul.u32 2221713035, %v202_v13  ;;  %v674_v43 = vshrl.u32 %v155_v37, 15  ;;  %vm469_vm4 = vcmp.eq.f32.partialorder %v1113_v10, inf }
  0x71   :  { %v456_v38 = vsel %vm455_vm0, %v1100_v52, %v454_v3  ;;  %v704_v9 = vshrl.u32 %v265_v51, 8  ;;  %vm471_vm5 = vcmp.eq.f32.partialorder %v1113_v10, 0.0  ;;  %v156_v4 = vmul.u32 2146121005, %v140_v30 }
  0x72   :  { %v459_v39 = vsel %vm457_vm1, %v458_v26, %v456_v38  ;;  %v463_v42 = vsel %vm462_vm2, %v1104_v44, %v461_v19  ;;  %v689_v54 = vshrl.u32 %v218_v22, 16  ;;  %v203_v58 = vxor.u32 %v674_v43, %v155_v37 }
  0x73   :  { %v716_v63 = vadd.f32 -1.0, %v459_v39  ;;  %v466_v17 = vsel %vm464_vm3, %v465_v25, %v463_v42  ;;  %v313_v52 = vcvt.s32.f32 %v704_v9  ;;  %v472_v44 = vand.u32 2147483648, %v1113_v10 }
  0x74   :  { %v717_v28 = vadd.f32 -1.0, %v466_v17  ;;  %vm476_vm6 = vcmp.eq.f32.partialorder %v1115_v21, inf  ;;  %v266_v20 = vxor.u32 %v689_v54, %v218_v22  ;;  %vm478_vm7 = vcmp.eq.f32.partialorder %v1115_v21, 0.0 }
  0x75   :  { %v533_v55 = vmul.f32 %v716_v63, %v389_v50  ;;  %v749_v45 = vpop.eup %748  ;;  %v479_v8 = vand.u32 2147483648, %v1115_v21  ;;  %v329_v0 = vmul.f32 5.9604645e-08, %v313_v52  ;;  %v219_v46 = vmul.u32 2221713035, %v203_v58 }
  0x76   :  { %v534_v1 = vmul.f32 %v717_v28, %v390_v33  ;;  %v468_v34 = vmul.f32 %v749_v45, %v1113_v10  ;;  %v705_v32 = vshrl.u32 %v266_v20, 8  ;;  %v675_v48 = vshrl.u32 %v156_v4, 15 }
  0x77   :  { %v571_v57 = vmul.f32 %v884_v23, %v533_v55  ;;  %v751_v5 = vpop.eup %750  ;;  %752 = vrsqrt.f32 %v329_v0  ;;  %v391_v7 = vsub.f32 1.0, %v375_v47  ;;  %v345_v16 = vand.u32 1, %v265_v51 }
  0x78   :  { %v572_v18 = vmul.f32 %v886_v24, %v534_v1  ;;  %v475_v2 = vmul.f32 %v751_v5, %v1115_v21  ;;  %v470_v12 = vsel %vm469_vm4, %v1113_v10, %v468_v34  ;;  %v392_v50 = vsub.f32 1.0, %v376_v41  ;;  %v589_v10 = vld [vmem:[#allocation4 + $0x50] sm:$0xff] }
  0x79   :  { %v603_v62 = vadd.f32 %v587_v11, %v571_v57  ;;  %v473_v35 = vsel %vm471_vm5, %v472_v44, %v470_v12  ;;  %v314_v59 = vcvt.s32.f32 %v705_v32  ;;  %v690_v29 = vshrl.u32 %v219_v46, 16  ;;  %v591_v57 = vld [vmem:[#allocation4 + $0x60] sm:$0xff]  ;;  %v592_v12 = vld [vmem:[#allocation4 + $0x68] sm:$0xff] }
  0x7a   :  { %v604_v49 = vadd.f32 %v588_v40, %v572_v18  ;;  %v477_v53 = vsel %vm476_vm6, %v1115_v21, %v475_v2  ;;  %v718_v60 = vadd.f32 -1.0, %v473_v35  ;;  %v204_v26 = vxor.u32 %v675_v48, %v156_v4 }
  0x7b   :  { %619 = vst [vmem:[#allocation7 + $0x40] sm:$0xff] %v603_v62  ;;  %v480_v6 = vsel %vm478_vm7, %v479_v8, %v477_v53  ;;  %v330_v61 = vmul.f32 5.9604645e-08, %v314_v59  ;;  %v361_v15 = vcvt.s32.f32 %v345_v16  ;;  %v267_v3 = vxor.u32 %v690_v29, %v219_v46 }
  0x7c   :  { %620 = vst [vmem:[#allocation7 + $0x48] sm:$0xff] %v604_v49  ;;  %v719_v14 = vadd.f32 -1.0, %v480_v6  ;;  %v535_v33 = vmul.f32 %v718_v60, %v391_v7  ;;  %v346_v19 = vand.u32 1, %v266_v20  ;;  %v220_v38 = vmul.u32 2221713035, %v204_v26 }
  0x7d   :  { %754 = vrsqrt.f32 %v330_v61  ;;  %v706_v13 = vshrl.u32 %v267_v3, 8  ;;  %v377_v47 = vmul.f32 2.0, %v361_v15  ;;  %vm483_vm8 = vcmp.eq.f32.partialorder %v329_v0, inf }
  0x7e   :  { %v536_v25 = vmul.f32 %v719_v14, %v392_v50  ;;  %v573_v31 = vmul.f32 %v891_v27, %v535_v33  ;;  %v486_v42 = vand.u32 2147483648, %v329_v0  ;;  %v691_v22 = vshrl.u32 %v220_v38, 16  ;;  %v593_v33 = vld [vmem:[#allocation4 + $0x70] sm:$0xff] }
  0x7f   :  { %v315_v51 = vcvt.s32.f32 %v706_v13  ;;  %vm485_vm9 = vcmp.eq.f32.partialorder %v329_v0, 0.0  ;;  %v362_v63 = vcvt.s32.f32 %v346_v19  ;;  %v393_v9 = vsub.f32 1.0, %v377_v47  ;;  %v594_v13 = vld [vmem:[#allocation4 + $0x78] sm:$0xff] }
  0x80   :  { %v574_v37 = vmul.f32 %v903_v56, %v536_v25  ;;  %v605_v21 = vadd.f32 %v589_v10, %v573_v31  ;;  %v268_v41 = vxor.u32 %v691_v22, %v220_v38  ;;  %v347_v58 = vand.u32 1, %v267_v3 }
  0x81   :  { %v753_v30 = vpop.eup %752  ;;  %v331_v17 = vmul.f32 5.9604645e-08, %v315_v51  ;;  %v378_v4 = vmul.f32 2.0, %v362_v63  ;;  %vm490_vm10 = vcmp.eq.f32.partialorder %v330_v61, inf  ;;  %v493_v1 = vand.u32 2147483648, %v330_v61 }
  0x82   :  { %v606_v39 = vadd.f32 %v590_v36, %v574_v37  ;;  %621 = vst [vmem:[#allocation7 + $0x50] sm:$0xff] %v605_v21  ;;  %v482_v43 = vmul.f32 %v753_v30, %v329_v0  ;;  %v707_v55 = vshrl.u32 %v268_v41, 8  ;;  %vm492_vm11 = vcmp.eq.f32.partialorder %v330_v61, 0.0 }
  0x83   :  { %756 = vrsqrt.f32 %v331_v17  ;;  %v363_v40 = vcvt.s32.f32 %v347_v58  ;;  %v394_v18 = vsub.f32 1.0, %v378_v4  ;;  %v348_v62 = vand.u32 1, %v268_v41 }
  0x84   :  { %622 = vst [vmem:[#allocation7 + $0x58] sm:$0xff] %v606_v39  ;;  %v484_v28 = vsel %vm483_vm8, %v329_v0, %v482_v43  ;;  %v316_v44 = vcvt.s32.f32 %v707_v55  ;;  %vm497_vm12 = vcmp.eq.f32.partialorder %v331_v17, inf  ;;  %v500_v7 = vand.u32 2147483648, %v331_v17 }
  0x85   :  { %v487_v54 = vsel %vm485_vm9, %v486_v42, %v484_v28  ;;  %v379_v2 = vmul.f32 2.0, %v363_v40  ;;  %vm499_vm13 = vcmp.eq.f32.partialorder %v331_v17, 0.0  ;;  %v364_v50 = vcvt.s32.f32 %v348_v62 }
  0x86   :  { %v720_v52 = vadd.f32 -1.0, %v487_v54  ;;  %v332_v8 = vmul.f32 5.9604645e-08, %v316_v44 }
  0x87   :  { %v755_v11 = vpop.eup %754  ;;  %v380_v29 = vmul.f32 2.0, %v364_v50 }
  0x88   :  { %v537_v20 = vmul.f32 %v720_v52, %v393_v9  ;;  %v489_v45 = vmul.f32 %v755_v11, %v330_v61  ;;  %758 = vrsqrt.f32 %v332_v8  ;;  %vm504_vm14 = vcmp.eq.f32.partialorder %v332_v8, inf }
  0x89   :  { %v507_v26 = vand.u32 2147483648, %v332_v8  ;;  %vm506_vm15 = vcmp.eq.f32.partialorder %v332_v8, 0.0  ;;  %v396_v10 = vsub.f32 1.0, %v380_v29 }
  0x8a   :  { %v575_v5 = vmul.f32 %v884_v23, %v537_v20  ;;  %v491_v0 = vsel %vm490_vm10, %v330_v61, %v489_v45  ;;  %v395_v23 = vsub.f32 1.0, %v379_v2 }
  0x8b   :  { %v494_v34 = vsel %vm492_vm11, %v493_v1, %v491_v0 }
  0x8c   :  { %v607_v32 = vadd.f32 %v591_v57, %v575_v5  ;;  %v721_v46 = vadd.f32 -1.0, %v494_v34 }
  0x8d   :  { %v757_v48 = vpop.eup %756 }
  0x8e   :  { %623 = vst [vmem:[#allocation7 + $0x60] sm:$0xff] %v607_v32  ;;  %v538_v49 = vmul.f32 %v721_v46, %v394_v18  ;;  %v496_v16 = vmul.f32 %v757_v48, %v331_v17 }
  0x90   :  { %v576_v35 = vmul.f32 %v886_v24, %v538_v49  ;;  %v498_v53 = vsel %vm497_vm12, %v331_v17, %v496_v16 }
  0x91   :  { %v501_v60 = vsel %vm499_vm13, %v500_v7, %v498_v53 }
  0x92   :  { %v608_v59 = vadd.f32 %v592_v12, %v576_v35  ;;  %v722_v6 = vadd.f32 -1.0, %v501_v60  ;;  %v759_v14 = vpop.eup %758 }
  0x93   :  { %v503_v15 = vmul.f32 %v759_v14, %v332_v8 }
  0x94   :  { %624 = vst [vmem:[#allocation7 + $0x68] sm:$0xff] %v608_v59  ;;  %v539_v61 = vmul.f32 %v722_v6, %v395_v23 }
  0x95   :  { %v505_v25 = vsel %vm504_vm14, %v332_v8, %v503_v15 }
  0x96   :  { %v577_v3 = vmul.f32 %v891_v27, %v539_v61  ;;  %v508_v31 = vsel %vm506_vm15, %v507_v26, %v505_v25 }
  0x97   :  { %v723_v36 = vadd.f32 -1.0, %v508_v31 }
  0x98   :  { %v609_v24 = vadd.f32 %v593_v33, %v577_v3 }
  0x99   :  { %v540_v19 = vmul.f32 %v723_v36, %v396_v10 }
  0x9a   :  { %625 = vst [vmem:[#allocation7 + $0x70] sm:$0xff] %v609_v24 }
  0x9b   :  { %v578_v37 = vmul.f32 %v903_v56, %v540_v19 }
  0x9d   :  { %v610_v38 = vadd.f32 %v594_v13, %v578_v37 }
  0x9f   :  { %626 = vst [vmem:[#allocation7 + $0x78] sm:$0xff] %v610_v38 }
  0xa0   :  { %793 = shalt.err (!%p790_p12)
}
  0xa1   :  { %s794_s18 = scalar_lea.hbm %s1179_s3, 2048 }
  0xa2   :  { %p795_p13 = scmp.ne.s32.totalorder %s1179_s3, %s794_s18  ;;  %p798_p0 = scmp.lt.u32.totalorder %s794_s18, %s1179_s3 }
  0xa4   :  { %p800_p1 = pnand %p798_p0, %p795_p13 }
  0xa6   :  { %803 = shalt.err (!%p800_p1)
}
  0xa7   :  { %638 = dma.vmem_to_hbm [thread:$0]  %s633_s14, 2048, %s1179_s3, [#allocation6], %s809_s22, %s809_s22, %s810_s23  }
  0xa8   :  { %806 = dma.done.wait [#allocation6], 2048  }
  0xa9   :  { %807 = vsyncadd [#allocation6], 4294965248 }
  0xaa   :  { %642 = vsyncpa [#allocation5], 1 }
  0xab   :  { %643 = vsyncpa [#allocation6], 1 }

</bundles_post_ra>
